<compile_context>
chip_gen: v7x
topology: tpu7x:2x2x1
jax: 0.10.0
libtpu: 0.0.40
codegen_flags: <defaults>
</compile_context>

<pallas_src>
import math
import functools

import jax
import jax.numpy as jnp
from jax.experimental import pallas as pl
from jax.experimental.pallas import tpu as pltpu

_TN_CAP = 16384      # max batch rows (lanes of the intermediates) per grid step
_TARGET_STEPS = 8    # aim for >= this many grid steps at large N (v7x dual-TC)
_SMALL_N = 1024      # below this, use a single full block


def _round_up(a, b):
    return ((a + b - 1) // b) * b


def _choose_tile(n):
    """Pick (tile_n, grid) so big-N runs use large, 128-aligned lane tiles."""
    if n <= _SMALL_N:
        return n, 1                                  # block_shape == full dims
    tn = min(_TN_CAP, _round_up(-(-n // _TARGET_STEPS), 128))
    g = -(-n // tn)                                  # clipped tail block handled by Pallas
    return tn, g


# ---------------------------------------------------------------------------
# Fused Pallas kernel (component-major, batch on lanes)
# ---------------------------------------------------------------------------
def _gmm_fused_kernel(xt_ref, w_ref, cu_ref, *rest, nclass, compute_sup):
    """y[k,n] = 2*sum_d x*mean*scale - sum_d x^2*scale
              = -sum_d (x-mean)^2*scale + sum_d mean^2*scale

    out row 0: lse[n] = logsumexp_k(y[k,n] + cu[k])     (cu folds -sum mean^2*scale)
    out row 1: sup[n] = Nclass * sum_{k: class(k)==label[n]} (y[k,n] + cs[k])
    """
    if compute_sup:
        cs_ref, cls_ref, lab_ref, out_ref = rest
    else:
        (out_ref,) = rest

    xt = xt_ref[...]                                     # (Dp, TN) f32, batch on lanes
    x2 = jnp.concatenate([xt, xt * xt], axis=0)          # (2*Dp, TN), tile-aligned concat

    # Single fused MXU call: (Kp, 2*Dp) @ (2*Dp, TN) -> (Kp, TN), no transposes needed.
    y = jax.lax.dot_general(
        w_ref[...], x2, (((1,), (0,)), ((), ())),
        precision=jax.lax.Precision.HIGHEST,
        preferred_element_type=jnp.float32)              # (Kp, TN)

    # ---- unsupervised: logsumexp over components (sublane axis), lane-dense store
    yu = y + cu_ref[...]                                 # (Kp, TN) + (Kp, 1)
    m = jnp.max(yu, axis=0, keepdims=True)               # (1, TN)
    out_ref[0:1, :] = m + jnp.log(jnp.sum(jnp.exp(yu - m), axis=0, keepdims=True))

    # ---- supervised: sum over the labelled class's components, * Nclass ----------
    if compute_sup:
        ys = y + cs_ref[...]                             # (Kp, TN)
        mask = cls_ref[...] == lab_ref[...]              # (Kp,1)==(1,TN) -> (Kp,TN)
        out_ref[1:2, :] = (jnp.sum(jnp.where(mask, ys, 0.0), axis=0, keepdims=True)
                           * float(nclass))


# ---------------------------------------------------------------------------
# pallas_call wrapper
# ---------------------------------------------------------------------------
def _gmm_fused_call(x, w, cu, cs, cls, label, nclass):
    """Returns (lse, sel); sel is None when label is None. Each of shape (N,)."""
    n, d = x.shape
    kp = w.shape[0]
    dp = w.shape[1] // 2
    tn, g = _choose_tile(n)
    compute_sup = label is not None
    out_rows = 2 if compute_sup else 1

    # batch-on-lanes layout; zero-pad the contraction dim to a multiple of 8 sublanes
    # (zero rows of x and zero columns of W contribute nothing to the dot).
    xt = jnp.pad(jnp.transpose(x), ((0, dp - d), (0, 0)))       # (Dp, N)

    in_specs = [
        pl.BlockSpec((dp, tn), lambda i: (0, i)),        # x, batch-tiled on lanes
        pl.BlockSpec((kp, 2 * dp), lambda i: (0, 0)),    # packed [2*mean*scale | -scale]
        pl.BlockSpec((kp, 1), lambda i: (0, 0)),         # unsup const column
    ]
    args = [xt, w, cu]

    if compute_sup:
        # lane-dense label panel (1, G*TN); padded labels (-1) never match a class id.
        lab_flat = jnp.full((g * tn,), -1, dtype=jnp.int32)
        lab_flat = lab_flat.at[:n].set(label.astype(jnp.int32))
        lab = lab_flat.reshape(1, g * tn)
        in_specs += [
            pl.BlockSpec((kp, 1), lambda i: (0, 0)),     # sup const column
            pl.BlockSpec((kp, 1), lambda i: (0, 0)),     # component class ids
            pl.BlockSpec((1, tn), lambda i: (0, i)),     # labels (lane-dense)
        ]
        args += [cs, cls, lab]

    kernel = functools.partial(_gmm_fused_kernel, nclass=nclass,
                               compute_sup=compute_sup)
    out = pl.pallas_call(
        kernel,
        out_shape=jax.ShapeDtypeStruct((out_rows, g * tn), jnp.float32),
        grid=(g,),
        in_specs=in_specs,
        out_specs=pl.BlockSpec((out_rows, tn), lambda i: (0, i)),
        compiler_params=pltpu.CompilerParams(
            dimension_semantics=("parallel",)),
    )(*args)

    lse = out[0, :n]
    sel = out[1, :n] if compute_sup else None
    return lse, sel


# ---------------------------------------------------------------------------
# Module (parameter container + forward glue)
# ---------------------------------------------------------------------------
class GaussianMixtureSupervisedPallas:
    """JAX/Pallas port of GaussianMixtureSupervised.forward."""

    def __init__(self, Nclass, Ncompperclass, dim, covariance_type="isotropic",
                 mean_init=(2.0, 5.0), sd_init=(0.5, 1.0), alpha=1, key=None):
        self.Nclass = Nclass
        self.Ncpc = Ncompperclass
        self.dim = dim
        self.n_mix_comp = Nclass * Ncompperclass
        self._weight_alpha = alpha
        self._mean_radius = float(mean_init[0])
        self._mean_sharpness = float(mean_init[1])
        self._sd_init = sd_init
        self._pi_term = -0.5 * dim * math.log(2.0 * math.pi)

        if covariance_type == "diagonal":
            self._neglogvar_factor = 0.5
            self._neglogvar_dim = dim
        elif covariance_type == "isotropic":
            self._neglogvar_factor = dim * 0.5
            self._neglogvar_dim = 1
        else:
            raise ValueError("covariance_type must be 'isotropic' or 'diagonal'")

        # ----- deterministic parameter init (synthetic, no checkpoints) -----
        if key is None:
            key = jax.random.PRNGKey(0)
        k1, k2 = jax.random.split(key)
        s = jax.random.normal(k1, (self.n_mix_comp, dim), dtype=jnp.float32)
        s = s / jnp.linalg.norm(s, axis=-1, keepdims=True)
        r = self._mean_radius * jax.random.uniform(
            k2, (self.n_mix_comp, 1), dtype=jnp.float32) ** (1.0 / dim)
        self.mean = (s * r).astype(jnp.float32)                       # (K, D)
        self.neglogvar = jnp.full(
            (self.n_mix_comp, self._neglogvar_dim),
            -2.0 * math.log(sd_init[0]), dtype=jnp.float32)           # (K, nlv)
        self.weight = jnp.ones((self.n_mix_comp,), dtype=jnp.float32)  # (K,)

        self._dirichlet_constant = (
            math.lgamma(self.n_mix_comp * alpha)
            - self.n_mix_comp * math.lgamma(alpha))

    # scalar, parameter-only prior terms (glue, not the hot path)
    def _prior_log_prob(self):
        p = self._dirichlet_constant
        if self._weight_alpha != 1:
            p = p + (self._weight_alpha - 1.0) * jnp.sum(
                jnp.log(jax.nn.softmax(self.weight)))
        # softball prior on means
        norm_c = (math.lgamma(1.0 + self.dim * 0.5)
                  - self.dim * (math.log(self._mean_radius)
                                + 0.5 * math.log(math.pi)))
        r = jnp.sqrt(jnp.sum(self.mean ** 2, axis=-1))
        p = p + jnp.sum(norm_c - jnp.log1p(
            jnp.exp(self._mean_sharpness * (r / self._mean_radius - 1.0))))
        # Gaussian prior on neglogvar
        mu = -2.0 * math.log(self._sd_init[0])
        sd = self._sd_init[1]
        p = p + jnp.sum(-0.5 * ((self.neglogvar - mu) / sd) ** 2
                        - math.log(sd) - 0.5 * math.log(2.0 * math.pi))
        return p

    def _packed_params(self):
        """Build the fused MXU operand and per-component constants (once per call)."""
        K, D = self.n_mix_comp, self.dim
        kp = _round_up(K, 8)
        dp = _round_up(D, 8)

        # scale = 1 / (2 * covariance) = 0.5 * exp(neglogvar), broadcast over D
        scale = jnp.broadcast_to(
            0.5 * jnp.exp(self.neglogvar), (K, D)).astype(jnp.float32)
        wc = (2.0 * self.mean * scale).astype(jnp.float32)            # (K, D)
        ws = (-scale).astype(jnp.float32)                             # (K, D)
        m2s = jnp.sum(self.mean * self.mean * scale, axis=-1)         # (K,)

        cu = (self._neglogvar_factor * jnp.sum(self.neglogvar, axis=-1)
              + self._pi_term + jax.nn.log_softmax(self.weight) - m2s)

        # TODO(synk): like the PyTorch reference, the supervised neglogvar/scale
        # broadcast is only exactly faithful for Ncpc == 1 (the reference itself
        # fails to broadcast otherwise); for Ncpc > 1 we use the natural
        # per-component generalization.
        cs = ((self._neglogvar_factor * jnp.sum(
                   self.neglogvar.reshape(self.Nclass, self.Ncpc, -1), axis=-1)
               + self._pi_term
               + jax.nn.log_softmax(
                   self.weight.reshape(self.Nclass, self.Ncpc), axis=-1)
               ).reshape(-1) - m2s)

        # fused operand: y = W @ [x ; x*x], W = [2*mean*scale | -scale], zero-padded
        w = jnp.zeros((kp, 2 * dp), jnp.float32)
        w = w.at[:K, :D].set(wc)
        w = w.at[:K, dp:dp + D].set(ws)

        # padded components: zero matmul contribution, -1e30 unsup const (exp -> 0 in
        # f32), class id that never matches any label.
        cu = jnp.pad(cu, (0, kp - K),
                     constant_values=-1e30).reshape(kp, 1).astype(jnp.float32)
        cs = jnp.pad(cs, (0, kp - K),
                     constant_values=0.0).reshape(kp, 1).astype(jnp.float32)
        cls = jnp.pad(jnp.arange(K, dtype=jnp.int32) // self.Ncpc, (0, kp - K),
                      constant_values=-1_000_000).reshape(kp, 1)
        return w, cu, cs, cls

    def forward(self, x, label=None):
        x = jnp.asarray(x, jnp.float32)
        w, cu, cs, cls = self._packed_params()

        lab = None if label is None else jnp.asarray(label, jnp.int32)
        lse, sel = _gmm_fused_call(x, w, cu, cs, cls, lab, self.Nclass)

        prior = self._prior_log_prob()
        if label is None:
            return -(lse + prior)

        # fully-supervised result (reference: no abs)
        pure_sup = -(sel + prior)
        # mixed-batch result (reference: abs on labelled rows; unlabelled rows
        # reduce to +lse after the prior cancellation in the reference code)
        mixed = jnp.where(lab == 999, lse, -(jnp.abs(sel) + prior))
        has_unlabeled = jnp.any(lab == 999)          # device-side, no host sync
        return jnp.where(has_unlabeled, mixed, pure_sup)

    def log_prob(self, x, label=None):
        return -self.forward(x, label=label)


# ---------------------------------------------------------------------------
# Pure-JAX reference (mirrors the PyTorch ops) for verification
# ---------------------------------------------------------------------------
def _ref_forward(gmm, x, label=None):
    prior = gmm._prior_log_prob()
    cov = jnp.exp(-gmm.neglogvar)

    def unsup(xx):
        y = -jnp.sum((xx[:, None, :] - gmm.mean) ** 2 / (2.0 * cov), axis=-1)
        y = y + gmm._neglogvar_factor * jnp.sum(gmm.neglogvar, axis=-1)
        y = y + gmm._pi_term + jax.nn.log_softmax(gmm.weight)
        y = jax.scipy.special.logsumexp(y, axis=-1)
        return -(y + prior)

    if label is None:
        return unsup(x)

    n = x.shape[0]
    mean_r = gmm.mean.reshape(gmm.Nclass, gmm.Ncpc, -1)
    y = -jnp.sum((x[:, None, None, :] - mean_r) ** 2
                 * (0.5 * jnp.exp(gmm.neglogvar[:, None, :])), axis=-1)
    y = y + gmm._neglogvar_factor * jnp.sum(
        gmm.neglogvar.reshape(gmm.Nclass, gmm.Ncpc, -1), axis=-1)
    y = y + gmm._pi_term
    y = y + jax.nn.log_softmax(gmm.weight.reshape(gmm.Nclass, gmm.Ncpc), axis=-1)
    y = jnp.sum(y, axis=-1)                                       # (N, Nclass)

    if bool(jnp.any(label == 999)):                               # test-only code path
        y_unsup_final = unsup(x)
        lbl = jnp.where(label == 999, 0, label)
        ysel = jnp.abs(y[jnp.arange(n), lbl] * gmm.Nclass)
        yc = jnp.where(label == 999, y_unsup_final, ysel)
        return -(yc + prior)
    ysel = y[jnp.arange(n), label] * gmm.Nclass
    return -(ysel + prior)


# ---------------------------------------------------------------------------
if __name__ == "__main__":
    Nclass, Ncpc, dim = 5, 1, 16
    N = 16

    gmm = GaussianMixtureSupervisedPallas(
        Nclass, Ncpc, dim, covariance_type="isotropic",
        mean_init=(2.0, 5.0), sd_init=(0.5, 1.0), alpha=1,
        key=jax.random.PRNGKey(0))

    kx, kl, kx2, kl2 = jax.random.split(jax.random.PRNGKey(0), 4)
    x = jax.random.normal(kx, (N, dim), dtype=jnp.float32)
    label = jax.random.randint(kl, (N,), 0, Nclass, dtype=jnp.int32)
    label_mixed = label.at[::4].set(999)

    # ----- small, single-tile checks (unsup / sup / mixed) -----
    y_unsup = jax.block_until_ready(gmm.forward(x))
    y_sup = jax.block_until_ready(gmm.forward(x, label))
    y_mix = jax.block_until_ready(gmm.forward(x, label_mixed))

    r_unsup = _ref_forward(gmm, x)
    r_sup = _ref_forward(gmm, x, label)
    r_mix = _ref_forward(gmm, x, label_mixed)

    assert y_unsup.shape == (N,) and y_sup.shape == (N,) and y_mix.shape == (N,)
    assert jnp.allclose(y_unsup, r_unsup, rtol=1e-3, atol=1e-3)
    assert jnp.allclose(y_sup, r_sup, rtol=1e-3, atol=1e-3)
    assert jnp.allclose(y_mix, r_mix, rtol=1e-3, atol=1e-3)

    # ----- multi-tile check (grid > 1, clipped tail block, label padding) -----
    N2 = 2500
    x2 = jax.random.normal(kx2, (N2, dim), dtype=jnp.float32)
    label2 = jax.random.randint(kl2, (N2,), 0, Nclass, dtype=jnp.int32)
    label2_mixed = label2.at[::7].set(999)

    y2_unsup = jax.block_until_ready(gmm.forward(x2))
    y2_sup = jax.block_until_ready(gmm.forward(x2, label2))
    y2_mix = jax.block_until_ready(gmm.forward(x2, label2_mixed))
    r2_unsup = _ref_forward(gmm, x2)
    r2_sup = _ref_forward(gmm, x2, label2)
    r2_mix = _ref_forward(gmm, x2, label2_mixed)

    assert y2_unsup.shape == (N2,) and y2_sup.shape == (N2,) and y2_mix.shape == (N2,)
    assert jnp.allclose(y2_unsup, r2_unsup, rtol=1e-3, atol=1e-3)
    assert jnp.allclose(y2_sup, r2_sup, rtol=1e-3, atol=1e-3)
    assert jnp.allclose(y2_mix, r2_mix, rtol=1e-3, atol=1e-3)

    print("KERNEL_OK")
</pallas_src>

<mosaic_0001>
module attributes {stable_mosaic.version = 11 : i64} {
  func.func @_gmm_fused_kernel(%arg0: i32, %arg1: memref<16x16xf32, #tpu.memory_space<vmem>>, %arg2: memref<8x32xf32, #tpu.memory_space<vmem>>, %arg3: memref<8x1xf32, #tpu.memory_space<vmem>>, %arg4: memref<1x16xf32, #tpu.memory_space<vmem>>) attributes {dimension_semantics = [#tpu.dimension_semantics<parallel>], iteration_bounds = array<i64: 1>, scalar_prefetch = 0 : i64, scratch_operands = 0 : i64, tpu.core_type = #tpu.core_type<tc>, window_params = [{transform_indices = @transform_0, window_bounds = array<i64: 16, 16>}, {pipeline_mode = #tpu.pipeline_mode<synchronous>, transform_indices = @transform_1, window_bounds = array<i64: 8, 32>}, {pipeline_mode = #tpu.pipeline_mode<synchronous>, transform_indices = @transform_2, window_bounds = array<i64: 8, 1>}, {transform_indices = @transform_3, window_bounds = array<i64: 1, 16>}]} {
    %c0 = arith.constant 0 : index
    %c0_0 = arith.constant 0 : index
    %0 = vector.load %arg1[%c0, %c0_0] : memref<16x16xf32, #tpu.memory_space<vmem>>, vector<16x16xf32>
    %1 = arith.mulf %0, %0 : vector<16x16xf32>
    %2 = tpu.concatenate %0, %1 in 0 : vector<16x16xf32>, vector<16x16xf32> -> vector<32x16xf32>
    %c0_1 = arith.constant 0 : index
    %c0_2 = arith.constant 0 : index
    %3 = vector.load %arg2[%c0_1, %c0_2] : memref<8x32xf32, #tpu.memory_space<vmem>>, vector<8x32xf32>
    %cst = arith.constant dense<0.000000e+00> : vector<8x16xf32>
    %4 = tpu.matmul %3, %2, %cst {dimension_numbers = #tpu.dot_dimension_numbers<[1], [0], [0], [1], [0, 0, 1, 1], [], []>, precision = #tpu.contract_precision<fp32>} : vector<8x32xf32>, vector<32x16xf32>, vector<8x16xf32> -> vector<8x16xf32>
    %c0_3 = arith.constant 0 : index
    %c0_4 = arith.constant 0 : index
    %5 = vector.load %arg3[%c0_3, %c0_4] : memref<8x1xf32, #tpu.memory_space<vmem>>, vector<8x1xf32>
    %6 = vector.broadcast %5 : vector<8x1xf32> to vector<8x16xf32>
    %7 = arith.addf %4, %6 : vector<8x16xf32>
    %cst_5 = arith.constant dense<0xFF800000> : vector<16xf32>
    %8 = vector.multi_reduction <maximumf>, %7, %cst_5 [0] : vector<8x16xf32> to vector<16xf32>
    %9 = vector.shape_cast %8 : vector<16xf32> to vector<1x16xf32>
    %10 = vector.broadcast %9 : vector<1x16xf32> to vector<8x16xf32>
    %11 = arith.subf %7, %10 : vector<8x16xf32>
    %12 = math.exp %11 : vector<8x16xf32>
    %cst_6 = arith.constant dense<0.000000e+00> : vector<16xf32>
    %13 = vector.multi_reduction <add>, %12, %cst_6 [0] : vector<8x16xf32> to vector<16xf32>
    %14 = vector.shape_cast %13 : vector<16xf32> to vector<1x16xf32>
    %15 = math.log %14 : vector<1x16xf32>
    %16 = arith.addf %9, %15 : vector<1x16xf32>
    %c0_7 = arith.constant 0 : index
    %c0_8 = arith.constant 0 : index
    %17 = vector.load %arg4[%c0_7, %c0_8] : memref<1x16xf32, #tpu.memory_space<vmem>>, vector<1x16xf32>
    tpu.vector_store %arg4[%c0_7, %c0_8], %16 {strides = array<i32>} : memref<1x16xf32, #tpu.memory_space<vmem>>, vector<1x16xf32>,
    return
  }
  func.func @transform_0(%arg0: i32) -> (i32, i32) {
    %c0_i32 = arith.constant 0 : i32
    %c0_i32_0 = arith.constant 0 : i32
    return %c0_i32, %arg0 : i32, i32
  }
  func.func @transform_1(%arg0: i32) -> (i32, i32) {
    %c0_i32 = arith.constant 0 : i32
    %c0_i32_0 = arith.constant 0 : i32
    %c0_i32_1 = arith.constant 0 : i32
    return %c0_i32, %c0_i32_0 : i32, i32
  }
  func.func @transform_2(%arg0: i32) -> (i32, i32) {
    %c0_i32 = arith.constant 0 : i32
    %c0_i32_0 = arith.constant 0 : i32
    %c0_i32_1 = arith.constant 0 : i32
    return %c0_i32, %c0_i32_0 : i32, i32
  }
  func.func @transform_3(%arg0: i32) -> (i32, i32) {
    %c0_i32 = arith.constant 0 : i32
    %c0_i32_0 = arith.constant 0 : i32
    return %c0_i32, %arg0 : i32, i32
  }
}

</mosaic_0001>

<bundles_post_ra>
// kernel: tpu_custom_call.1
= control target key start
LH: loop header
LB: loop body
LE: loop exit
PB: predicated region body
PF: predicated region fallthrough
CT: control target
= control target key end

     0   :  { %8 = vsyncpa [#allocation3], 0  ;;  %s852_s0 = inlined_call_operand.hbm [shape: f32[16,16], index: 0, kind: input, shape index: {}]   ;;  %s853_s1 = inlined_call_operand.vmem [shape: f32[8,32], index: 1, kind: input, shape index: {}]   ;;  %s854_s2 = inlined_call_operand.vmem [shape: f32[8,1], index: 2, kind: input, shape index: {}]   ;;  %s855_s3 = inlined_call_operand.hbm [shape: f32[1,16], index: 3, kind: output, shape index: {}]  }
   0x1   :  { %9 = vsyncpa [#allocation4], 0  ;;  %s770_s12 = smov [#allocation2]   ;;  %s722_s16 = scalar_lea.hbm %s852_s0, 256 }
   0x2   :  { %s15_s13 = sshll.u32 %s770_s12, 4  ;;  %p723_p0 = scmp.ne.s32.totalorder %s852_s0, %s722_s16  ;;  %s16_s13 = int_to_ptr.vmem [resolvable:$true] %s15_s13 }
   0x3   :  { %p726_p1 = scmp.lt.u32.totalorder %s722_s16, %s852_s0 }
   0x5   :  { %p728_p2 = pnand %p726_p1, %p723_p0 }
   0x7   :  { %731 = shalt.err (!%p728_p2)
}
   0x8   :  { %s732_s21 = scalar_lea.vmem %s16_s13, 256  ;;  %p737_p4 = scmp.lt.s32.totalorder %s16_s13, %s16_s13 }
   0x9   :  { %p733_p3 = scmp.ne.s32.totalorder %s16_s13, %s732_s21  ;;  %p738_p5 = scmp.lt.s32.totalorder %s732_s21, %s732_s21 }
   0xb   :  { %p739_p6 = por %p738_p5, %p737_p4 }
   0xd   :  { %p740_p7 = pnand %p739_p6, %p733_p3 }
   0xf   :  { %743 = shalt.err (!%p740_p7)
}
  0x10   :  { %s771_s22 = smov 128   ;;  %s772_s23 = smov 8  }
  0x11   :  { %21 = dma.hbm_to_vmem [thread:$0]  %s852_s0, 256, %s16_s13, [#allocation3], %s771_s22, %s771_s22, %s772_s23  }
  0x12   :  { %766 = dma.done.wait [#allocation3], 256  }
  0x13   :  { %767 = vsyncadd [#allocation3], 4294967040  ;;  %v773_v0 = vmov 0.0|0.0   ;;  %vm774_vm0 = vmmov 0   ;;  %v775_v1 = vmov 0.0   ;;  %v776_v2 = vmov 0  }
  0x14   :  { %663 = vmatprep.subr.bf16.mxu1 %v773_v0  ;;  %681 = vmatprep.subr.bf16.mxu0 %v773_v0  ;;  %vm40_vm1 = vcmask 261120   ;;  %v29_v3 = vld [vmem:[#allocation2] sm:$0xff]  ;;  %v30_v4 = vld [vmem:[#allocation2 + $0x8] sm:$0xff]  ;;  %vm529_vm2 = vcmask 130048   ;;  %vm550_vm3 = vcmask 122880  }
  0x15   :  { %605 = vmatprep.mubr.msk.f32.mxu1 %vm774_vm0, %v775_v1  ;;  %638 = vmatprep.mubr.msk.f32.mxu0 %vm774_vm0, %v775_v1  ;;  %v33_v5 = vld [vmem:[%s853_s1] sm:$0xff]  ;;  %v45_v6 = vand.u32 4294901760, %v29_v3  ;;  %v48_v7 = vand.u32 4294901760, %v30_v4  ;;  %v31_v8 = vmul.f32 %v29_v3, %v29_v3  ;;  %v32_v9 = vmul.f32 %v30_v4, %v30_v4  ;;  %s777_s1 = smov [#allocation5]  }
  0x16   :  { %717 = vset.pattern.permute.xlu0 %v776_v2  ;;  %v34_v10 = vld [vmem:[%s854_s2] sm:$0xff]  ;;  %v42_v11 = vsel %vm40_vm1, %v33_v5, 0  ;;  %s558_s2 = sshll.u32 %s777_s1, 4  ;;  %s559_s2 = int_to_ptr.vmem [resolvable:$true] %s558_s2 }
  0x17   :  { %37 = vperm.xlu0 %717, %v34_v10   ;;  %v664_v12 = vpack.c.bf16 %v48_v7, %v45_v6  ;;  %v125_v13 = vsub.f32 %v29_v3, %v45_v6  ;;  %v132_v14 = vsub.f32 %v30_v4, %v48_v7  ;;  %v51_v15 = vand.u32 4294901760, %v31_v8  ;;  %s744_s29 = scalar_lea.vmem %s559_s2, 16  ;;  %s748_s30 = scalar_lea.vmem %s559_s2, 32 }
  0x18   :  { %v54_v16 = vand.u32 4294901760, %v32_v9  ;;  %v113_v17 = vand.u32 4294901760, %v42_v11  ;;  %p745_p8 = scmp.ne.s32.totalorder %s559_s2, %s744_s29  ;;  %p749_p9 = scmp.lt.s32.totalorder %s559_s2, %s559_s2 }
  0x19   :  { %665 = vmatpush3.bf16.msra.mxu1 %v664_v12  ;;  %683 = vmatpush3.bf16.msra.mxu0 %v664_v12  ;;  %v139_v18 = vsub.f32 %v31_v8, %v51_v15  ;;  %v126_v19 = vand.u32 4294901760, %v125_v13  ;;  %v133_v20 = vand.u32 4294901760, %v132_v14  ;;  %v676_v41 = vpack.c.bf16 %v132_v14, %v125_v13  ;;  %p750_p10 = scmp.lt.s32.totalorder %s748_s30, %s744_s29 }
  0x1a   :  { %666 = vmatprep.subr.bf16.mxu1 %v773_v0  ;;  %684 = vmatprep.subr.bf16.mxu0 %v773_v0  ;;  %v667_v21 = vpack.c.bf16 %v54_v16, %v51_v15  ;;  %v146_v22 = vsub.f32 %v32_v9, %v54_v16  ;;  %v114_v23 = vsub.f32 %v42_v11, %v113_v17 }
  0x1b   :  { %v127_v24 = vsub.f32 %v125_v13, %v126_v19  ;;  %v134_v25 = vsub.f32 %v132_v14, %v133_v20  ;;  %v140_v26 = vand.u32 4294901760, %v139_v18  ;;  %v688_v31 = vpack.c.bf16 %v133_v20, %v126_v19  ;;  %p751_p11 = por %p750_p10, %p749_p9 }
  0x1c   :  { %v115_v27 = vand.u32 4294901760, %v114_v23  ;;  %v147_v28 = vand.u32 4294901760, %v146_v22  ;;  %v679_v42 = vpack.c.bf16 %v146_v22, %v139_v18 }
  0x1d   :  { %668 = vmatpush3.bf16.msra.mxu1 %v667_v21  ;;  %686 = vmatpush3.bf16.msra.mxu0 %v667_v21  ;;  %v128_v29 = vand.u32 4294901760, %v127_v24  ;;  %v135_v30 = vand.u32 4294901760, %v134_v25  ;;  %v141_v32 = vsub.f32 %v139_v18, %v140_v26  ;;  %p752_p12 = pnand %p751_p11, %p745_p8 }
  0x1e   :  { %v116_v33 = vsub.f32 %v114_v23, %v115_v27  ;;  %669 = vmatprep.subr.bf16.mxu1 %v773_v0  ;;  %687 = vmatprep.subr.bf16.mxu0 %v773_v0  ;;  %v148_v34 = vsub.f32 %v146_v22, %v147_v28  ;;  %v691_v39 = vpack.c.bf16 %v147_v28, %v140_v26 }
  0x1f   :  { %v670_v35 = vpack.c.bf16 %v135_v30, %v128_v29  ;;  %v142_v36 = vand.u32 4294901760, %v141_v32 }
  0x20   :  { %v117_v37 = vand.u32 4294901760, %v116_v33  ;;  %639 = vmatmul.mubr.f32.vlgmr.msra.gmra.mrb[0].mxu0 %v115_v27  ;;  %v149_v38 = vand.u32 4294901760, %v148_v34 }
  0x21   :  { %689 = vmatpush3.bf16.msra.mxu0 %v688_v31  ;;  %649 = vmatprep.mubr.msk.f32.mxu0 %vm774_vm0, %v775_v1 }
  0x22   :  { %606 = vmatmul.mubr.f32.vlgmr.msra.gmra.mrb[0].mxu1 %v117_v37  ;;  %690 = vmatprep.subr.bf16.mxu0 %v773_v0  ;;  %v673_v40 = vpack.c.bf16 %v149_v38, %v142_v36 }
  0x23   :  { %671 = vmatpush3.bf16.msra.mxu1 %v670_v35  ;;  %616 = vmatprep.mubr.msk.f32.mxu1 %vm774_vm0, %v775_v1 }
  0x24   :  { %672 = vmatprep.subr.bf16.mxu1 %v773_v0 }
  0x25   :  { %692 = vmatpush3.bf16.msra.mxu0 %v691_v39 }
  0x26   :  { %693 = vmatprep.subr.bf16.mxu0 %v773_v0 }
  0x27   :  { %674 = vmatpush3.bf16.msra.mxu1 %v673_v40 }
  0x28   :  { %675 = vmatprep.subr.bf16.mxu1 %v773_v0  ;;  %650 = vmatmul.mubr.f32.vlgmr.msra.gmra.mrb[0].mxu0 %v113_v17 }
  0x29   :  { %695 = vmatpush3.bf16.msra.mxu0 %v664_v12  ;;  %660 = vmatprep.mubr.msk.f32.mxu0 %vm774_vm0, %v775_v1 }
  0x2a   :  { %617 = vmatmul.mubr.f32.vlgmr.msra.gmra.mrb[0].mxu1 %v113_v17  ;;  %696 = vmatprep.subr.bf16.mxu0 %v773_v0 }
  0x2b   :  { %677 = vmatpush3.bf16.msra.mxu1 %v676_v41  ;;  %627 = vmatprep.mubr.msk.f32.mxu1 %vm774_vm0, %v775_v1 }
  0x2c   :  { %678 = vmatprep.subr.bf16.mxu1 %v773_v0 }
  0x2d   :  { %698 = vmatpush3.bf16.msra.mxu0 %v667_v21 }
  0x2f   :  { %680 = vmatpush3.bf16.msra.mxu1 %v679_v42 }
  0x30   :  { %661 = vmatmul.mubr.f32.vlgmr.msra.gmra.mrb[0].mxu0 %v113_v17 }
  0x32   :  { %628 = vmatmul.mubr.f32.vlgmr.msra.gmra.mrb[0].mxu1 %v114_v23 }
  0x96   :  { %v38_v43 = vpop.permute.xlu0 %37 }
 0x103   :  { %v525_v44 = vpop.f32.mrb[0].mxu0 }
 0x104   :  { %v662_v45 = vpop.f32.mrb[1].mxu0 }
 0x105   :  { %v290_v46 = vpop.f32.mrb[0].mxu1 }
 0x106   :  { %v699_v47 = vadd.f32 %v290_v46, %v38_v43  ;;  %v629_v48 = vpop.f32.mrb[1].mxu1 }
 0x108   :  { %v700_v49 = vadd.f32 %v699_v47, %v525_v44 }
 0x10a   :  { %v530_v50 = vsel %vm529_vm2, %v700_v49, -inf }
 0x10b   :  { %v531_v51 = vrot.slane %v530_v50, 4 }
 0x10d   :  { %v532_v52 = vmax.f32 %v530_v50, %v531_v51 }
 0x10f   :  { %v533_v53 = vrot.slane %v532_v52, 2 }
 0x111   :  { %v534_v54 = vmax.f32 %v532_v52, %v533_v53 }
 0x113   :  { %v535_v55 = vrot.slane %v534_v54, 1 }
 0x115   :  { %v536_v56 = vmax.f32 %v534_v54, %v535_v55 }
 0x117   :  { %v537_v57 = vsub.f32 %v700_v49, %v536_v56 }
 0x119   :  { %v538_v58 = vmul.f32 1.442695, %v537_v57 }
 0x11b   :  { %718 = vpow2.f32 %v538_v58 }
 0x125   :  { %v719_v59 = vpop.eup %718 }
 0x126   :  { %v540_v60 = vsel %vm529_vm2, %v719_v59, 0.0 }
 0x127   :  { %v541_v61 = vrot.slane %v540_v60, 4 }
 0x129   :  { %v542_v62 = vadd.f32 %v541_v61, %v540_v60 }
 0x12b   :  { %v543_v63 = vrot.slane %v542_v62, 2 }
 0x12d   :  { %v544_v0 = vadd.f32 %v543_v63, %v542_v62 }
 0x12f   :  { %v545_v1 = vrot.slane %v544_v0, 1 }
 0x131   :  { %v546_v2 = vadd.f32 %v545_v1, %v544_v0 }
 0x133   :  { %720 = vlog2.f32 %v546_v2 }
 0x13d   :  { %v721_v3 = vpop.eup %720 }
 0x13e   :  { %v548_v4 = vmul.f32 0.6931472, %v721_v3 }
 0x140   :  { %v549_v5 = vadd.f32 %v548_v4, %v536_v56 }
 0x142   :  { %551 = vst.msk [vmem:[#allocation5] sm:$0x1] %vm550_vm3, %v549_v5 }
 0x143   :  { %755 = shalt.err (!%p752_p12)
}
 0x144   :  { %s756_s6 = scalar_lea.hbm %s855_s3, 16 }
 0x145   :  { %p757_p13 = scmp.ne.s32.totalorder %s855_s3, %s756_s6  ;;  %p760_p0 = scmp.lt.u32.totalorder %s756_s6, %s855_s3 }
 0x147   :  { %p762_p1 = pnand %p760_p0, %p757_p13 }
 0x149   :  { %765 = shalt.err (!%p762_p1)
}
 0x14a   :  { %561 = dma.vmem_to_hbm [thread:$0]  %s559_s2, 16, %s855_s3, [#allocation4]  }
 0x14b   :  { %768 = dma.done.wait [#allocation4], 16  }
 0x14c   :  { %769 = vsyncadd [#allocation4], 4294967280 }
 0x14d   :  { %565 = vsyncpa [#allocation3], 1 }
 0x14e   :  { %566 = vsyncpa [#allocation4], 1 }

</bundles_post_ra>
